<compile_context>
chip_gen: v7x
topology: tpu7x:2x2x1
jax: 0.10.0
libtpu: 0.0.40
codegen_flags: <defaults>
</compile_context>

<pallas_src>
import functools

import jax
import jax.numpy as jnp
from jax.experimental import pallas as pl
from jax.experimental.pallas import tpu as pltpu

INPUT_DIM = 217
F_PAD = 256          # feature dim padded to lane-aligned 256
H1 = 256
H2 = 128
OUT = 1


def _mlp_kernel(x_ref, w1_ref, b1_ref, w2_ref, b2_ref, w3_ref, b3_ref, o_ref):
    """Fused Linear->ReLU->Linear->ReLU->(128->1 reduce)->Sigmoid on one batch tile."""
    x = x_ref[...]  # (TB, 256) bf16

    # Layer 1: MXU matmul (bf16 operands), f32 accumulation; bias/ReLU in f32.
    h1 = jnp.dot(x, w1_ref[...], preferred_element_type=jnp.float32) + b1_ref[...]
    h1 = jnp.maximum(h1, 0.0)

    # Layer 2: MXU matmul (bf16 operands), f32 accumulation.
    h2 = jnp.dot(h1.astype(jnp.bfloat16), w2_ref[...],
                 preferred_element_type=jnp.float32) + b2_ref[...]
    h2 = jnp.maximum(h2, 0.0)

    # Layer 3 (128 -> 1): VPU multiply + lane reduction (avoids an N=1 MXU op).
    z = jnp.sum(h2 * w3_ref[...], axis=-1, keepdims=True) + b3_ref[...]
    o_ref[...] = jax.nn.sigmoid(z).astype(o_ref.dtype)


@functools.partial(jax.jit, static_argnames=("block_b",))
def net_forward(x, params, *, block_b=None):
    """x: (B, 217) f32 -> (B, 1) f32, matching PyTorch Net's Sequential."""
    w1, b1, w2, b2, w3, b3 = params
    B, F = x.shape
    assert F == INPUT_DIM

    if block_b is None:
        # Big batch tiles keep the MXU busy; the 512 cap keeps VMEM usage tiny
        # even on v7x (64 MiB) with default double-buffering.
        block_b = min(512, ((B + 127) // 128) * 128)
    n_tiles = (B + block_b - 1) // block_b
    B_pad = n_tiles * block_b

    # Pad batch to a multiple of block_b and features 217 -> 256 (zero pad);
    # cast matmul operands to bf16 (accumulation stays f32 inside the kernel).
    xp = jnp.pad(x.astype(jnp.bfloat16), ((0, B_pad - B), (0, F_PAD - F)))
    w1p = jnp.pad(w1.astype(jnp.bfloat16), ((0, F_PAD - F), (0, 0)))
    w2b = w2.astype(jnp.bfloat16)
    w3r = w3.reshape(1, H2).astype(jnp.float32)  # row vector for the lane reduction

    full = lambda shape: pl.BlockSpec(shape, lambda i: (0, 0))

    out = pl.pallas_call(
        _mlp_kernel,
        out_shape=jax.ShapeDtypeStruct((B_pad, OUT), jnp.float32),
        grid_spec=pltpu.PrefetchScalarGridSpec(
            num_scalar_prefetch=0,
            grid=(n_tiles,),
            in_specs=[
                pl.BlockSpec((block_b, F_PAD), lambda i: (i, 0)),  # x tile (bf16)
                full((F_PAD, H1)),   # w1 (bf16, zero-padded rows)
                full((1, H1)),       # b1 (f32)
                full((H1, H2)),      # w2 (bf16)
                full((1, H2)),       # b2 (f32)
                full((1, H2)),       # w3 row (f32)
                full((1, OUT)),      # b3 (f32)
            ],
            out_specs=pl.BlockSpec((block_b, OUT), lambda i: (i, 0)),
        ),
        compiler_params=pltpu.CompilerParams(
            dimension_semantics=("parallel",),
        ),
    )(xp, w1p, b1, w2b, b2, w3r, b3)

    return out[:B]


def init_params(key):
    """Deterministic init mimicking PyTorch nn.Linear default (U[-1/sqrt(fan_in), .])."""
    keys = jax.random.split(key, 6)

    def linear(kw, kb, fan_in, fan_out):
        bound = 1.0 / jnp.sqrt(jnp.float32(fan_in))
        w = jax.random.uniform(kw, (fan_in, fan_out), jnp.float32, -bound, bound)
        b = jax.random.uniform(kb, (1, fan_out), jnp.float32, -bound, bound)
        return w, b

    w1, b1 = linear(keys[0], keys[1], INPUT_DIM, H1)
    w2, b2 = linear(keys[2], keys[3], H1, H2)
    w3, b3 = linear(keys[4], keys[5], H2, OUT)
    return (w1, b1, w2, b2, w3, b3)


def reference_forward(x, params):
    w1, b1, w2, b2, w3, b3 = params
    h1 = jnp.maximum(x @ w1 + b1, 0.0)
    h2 = jnp.maximum(h1 @ w2 + b2, 0.0)
    return jax.nn.sigmoid(h2 @ w3 + b3)


if __name__ == "__main__":
    key = jax.random.PRNGKey(0)
    kp, kx = jax.random.split(key)

    params = init_params(kp)

    B = 16  # small demo batch; wrapper pads to the tile size internally
    x = jax.random.normal(kx, (B, INPUT_DIM), dtype=jnp.float32)

    out = net_forward(x, params)
    out = jax.block_until_ready(out)

    ref = reference_forward(x, params)
    assert out.shape == (B, 1)
    # bf16 matmul operands (f32 accumulation) -> compare with a looser tolerance.
    assert jnp.allclose(out, ref, atol=2e-2, rtol=2e-2), "mismatch vs JAX reference"

    print("KERNEL_OK")
</pallas_src>

<mosaic_0001>
module attributes {stable_mosaic.version = 11 : i64} {
  func.func @_mlp_kernel(%arg0: i32, %arg1: memref<128x256xbf16, #tpu.memory_space<vmem>>, %arg2: memref<256x256xbf16, #tpu.memory_space<vmem>>, %arg3: memref<1x256xf32, #tpu.memory_space<vmem>>, %arg4: memref<256x128xbf16, #tpu.memory_space<vmem>>, %arg5: memref<1x128xf32, #tpu.memory_space<vmem>>, %arg6: memref<1x128xf32, #tpu.memory_space<vmem>>, %arg7: memref<1x1xf32, #tpu.memory_space<vmem>>, %arg8: memref<128x1xf32, #tpu.memory_space<vmem>>) attributes {dimension_semantics = [#tpu.dimension_semantics<parallel>], iteration_bounds = array<i64: 1>, scalar_prefetch = 0 : i64, scratch_operands = 0 : i64, tpu.core_type = #tpu.core_type<tc>, window_params = [{transform_indices = @transform_0, window_bounds = array<i64: 128, 256>}, {pipeline_mode = #tpu.pipeline_mode<synchronous>, transform_indices = @transform_1, window_bounds = array<i64: 256, 256>}, {pipeline_mode = #tpu.pipeline_mode<synchronous>, transform_indices = @transform_2, window_bounds = array<i64: 1, 256>}, {pipeline_mode = #tpu.pipeline_mode<synchronous>, transform_indices = @transform_3, window_bounds = array<i64: 256, 128>}, {pipeline_mode = #tpu.pipeline_mode<synchronous>, transform_indices = @transform_4, window_bounds = array<i64: 1, 128>}, {pipeline_mode = #tpu.pipeline_mode<synchronous>, transform_indices = @transform_5, window_bounds = array<i64: 1, 128>}, {pipeline_mode = #tpu.pipeline_mode<synchronous>, transform_indices = @transform_6, window_bounds = array<i64: 1, 1>}, {transform_indices = @transform_7, window_bounds = array<i64: 128, 1>}]} {
    %c0 = arith.constant 0 : index
    %c0_0 = arith.constant 0 : index
    %0 = vector.load %arg1[%c0, %c0_0] : memref<128x256xbf16, #tpu.memory_space<vmem>>, vector<128x256xbf16>
    %c0_1 = arith.constant 0 : index
    %c0_2 = arith.constant 0 : index
    %1 = vector.load %arg2[%c0_1, %c0_2] : memref<256x256xbf16, #tpu.memory_space<vmem>>, vector<256x256xbf16>
    %cst = arith.constant dense<0.000000e+00> : vector<128x256xf32>
    %2 = tpu.matmul %0, %1, %cst {dimension_numbers = #tpu.dot_dimension_numbers<[1], [0], [0], [1], [0, 0, 1, 1], [], []>} : vector<128x256xbf16>, vector<256x256xbf16>, vector<128x256xf32> -> vector<128x256xf32>
    %c0_3 = arith.constant 0 : index
    %c0_4 = arith.constant 0 : index
    %3 = vector.load %arg3[%c0_3, %c0_4] : memref<1x256xf32, #tpu.memory_space<vmem>>, vector<1x256xf32>
    %4 = vector.broadcast %3 : vector<1x256xf32> to vector<128x256xf32>
    %5 = arith.addf %2, %4 : vector<128x256xf32>
    %cst_5 = arith.constant 0.000000e+00 : f32
    %6 = vector.broadcast %cst_5 : f32 to vector<128x256xf32>
    %7 = arith.maximumf %5, %6 : vector<128x256xf32>
    %8 = arith.truncf %7 : vector<128x256xf32> to vector<128x256xbf16>
    %c0_6 = arith.constant 0 : index
    %c0_7 = arith.constant 0 : index
    %9 = vector.load %arg4[%c0_6, %c0_7] : memref<256x128xbf16, #tpu.memory_space<vmem>>, vector<256x128xbf16>
    %cst_8 = arith.constant dense<0.000000e+00> : vector<128x128xf32>
    %10 = tpu.matmul %8, %9, %cst_8 {dimension_numbers = #tpu.dot_dimension_numbers<[1], [0], [0], [1], [0, 0, 1, 1], [], []>} : vector<128x256xbf16>, vector<256x128xbf16>, vector<128x128xf32> -> vector<128x128xf32>
    %c0_9 = arith.constant 0 : index
    %c0_10 = arith.constant 0 : index
    %11 = vector.load %arg5[%c0_9, %c0_10] : memref<1x128xf32, #tpu.memory_space<vmem>>, vector<1x128xf32>
    %12 = vector.broadcast %11 : vector<1x128xf32> to vector<128x128xf32>
    %13 = arith.addf %10, %12 : vector<128x128xf32>
    %cst_11 = arith.constant 0.000000e+00 : f32
    %14 = vector.broadcast %cst_11 : f32 to vector<128x128xf32>
    %15 = arith.maximumf %13, %14 : vector<128x128xf32>
    %c0_12 = arith.constant 0 : index
    %c0_13 = arith.constant 0 : index
    %16 = vector.load %arg6[%c0_12, %c0_13] : memref<1x128xf32, #tpu.memory_space<vmem>>, vector<1x128xf32>
    %17 = vector.broadcast %16 : vector<1x128xf32> to vector<128x128xf32>
    %18 = arith.mulf %15, %17 : vector<128x128xf32>
    %cst_14 = arith.constant dense<0.000000e+00> : vector<128xf32>
    %19 = vector.multi_reduction <add>, %18, %cst_14 [1] : vector<128x128xf32> to vector<128xf32>
    %20 = vector.shape_cast %19 : vector<128xf32> to vector<128x1xf32>
    %c0_15 = arith.constant 0 : index
    %c0_16 = arith.constant 0 : index
    %21 = vector.load %arg7[%c0_15, %c0_16] : memref<1x1xf32, #tpu.memory_space<vmem>>, vector<1x1xf32>
    %22 = vector.broadcast %21 : vector<1x1xf32> to vector<128x1xf32>
    %23 = arith.addf %20, %22 : vector<128x1xf32>
    %24 = arith.negf %23 : vector<128x1xf32>
    %25 = math.exp %24 : vector<128x1xf32>
    %cst_17 = arith.constant 1.000000e+00 : f32
    %26 = vector.broadcast %cst_17 : f32 to vector<128x1xf32>
    %27 = arith.addf %26, %25 : vector<128x1xf32>
    %28 = arith.divf %26, %27 : vector<128x1xf32>
    %c0_18 = arith.constant 0 : index
    %c0_19 = arith.constant 0 : index
    %29 = vector.load %arg8[%c0_18, %c0_19] : memref<128x1xf32, #tpu.memory_space<vmem>>, vector<128x1xf32>
    tpu.vector_store %arg8[%c0_18, %c0_19], %28 {strides = array<i32>} : memref<128x1xf32, #tpu.memory_space<vmem>>, vector<128x1xf32>,
    return
  }
  func.func @transform_0(%arg0: i32) -> (i32, i32) {
    %c0_i32 = arith.constant 0 : i32
    %c0_i32_0 = arith.constant 0 : i32
    return %arg0, %c0_i32 : i32, i32
  }
  func.func @transform_1(%arg0: i32) -> (i32, i32) {
    %c0_i32 = arith.constant 0 : i32
    %c0_i32_0 = arith.constant 0 : i32
    %c0_i32_1 = arith.constant 0 : i32
    return %c0_i32, %c0_i32_0 : i32, i32
  }
  func.func @transform_2(%arg0: i32) -> (i32, i32) {
    %c0_i32 = arith.constant 0 : i32
    %c0_i32_0 = arith.constant 0 : i32
    %c0_i32_1 = arith.constant 0 : i32
    return %c0_i32, %c0_i32_0 : i32, i32
  }
  func.func @transform_3(%arg0: i32) -> (i32, i32) {
    %c0_i32 = arith.constant 0 : i32
    %c0_i32_0 = arith.constant 0 : i32
    %c0_i32_1 = arith.constant 0 : i32
    return %c0_i32, %c0_i32_0 : i32, i32
  }
  func.func @transform_4(%arg0: i32) -> (i32, i32) {
    %c0_i32 = arith.constant 0 : i32
    %c0_i32_0 = arith.constant 0 : i32
    %c0_i32_1 = arith.constant 0 : i32
    return %c0_i32, %c0_i32_0 : i32, i32
  }
  func.func @transform_5(%arg0: i32) -> (i32, i32) {
    %c0_i32 = arith.constant 0 : i32
    %c0_i32_0 = arith.constant 0 : i32
    %c0_i32_1 = arith.constant 0 : i32
    return %c0_i32, %c0_i32_0 : i32, i32
  }
  func.func @transform_6(%arg0: i32) -> (i32, i32) {
    %c0_i32 = arith.constant 0 : i32
    %c0_i32_0 = arith.constant 0 : i32
    %c0_i32_1 = arith.constant 0 : i32
    return %c0_i32, %c0_i32_0 : i32, i32
  }
  func.func @transform_7(%arg0: i32) -> (i32, i32) {
    %c0_i32 = arith.constant 0 : i32
    %c0_i32_0 = arith.constant 0 : i32
    return %arg0, %c0_i32 : i32, i32
  }
}

</mosaic_0001>

<bundles_post_ra>
// kernel: net_forward.1
= control target key start
LH: loop header
LB: loop body
LE: loop exit
PB: predicated region body
PF: predicated region fallthrough
CT: control target
= control target key end

     0   :  { %vm912_vm0 = vcmask 7168   ;;  %s1630_s1 = inlined_call_operand.vmem [shape: bf16[256,256], index: 1, kind: input, shape index: {}]   ;;  %s1631_s0 = inlined_call_operand.vmem [shape: bf16[128,256], index: 0, kind: input, shape index: {}]   ;;  %s1632_s3 = inlined_call_operand.vmem [shape: bf16[256,128], index: 3, kind: input, shape index: {}]   ;;  %s1633_s2 = inlined_call_operand.vmem [shape: f32[1,256], index: 2, kind: input, shape index: {}]   ;;  %s1634_s6 = inlined_call_operand.<no memory space> [shape: f32[1,1], index: 6, kind: input, shape index: {}]   ;;  %s1635_s4 = inlined_call_operand.vmem [shape: f32[1,128], index: 4, kind: input, shape index: {}]   ;;  %s1636_s5 = inlined_call_operand.vmem [shape: f32[1,128], index: 5, kind: input, shape index: {}]   ;;  %s1637_s7 = inlined_call_operand.vmem [shape: f32[128,1], index: 7, kind: output, shape index: {}]  }
   0x1   :  { %v1080_v0 = vld [vmem:[%s1630_s1 + $0x4] ss:$8 sps:$4 sm:$0xff]   ;;  %v1082_v1 = vld [vmem:[%s1630_s1] ss:$8 sps:$4 sm:$0xff]   ;;  %v1083_v2 = vld [vmem:[%s1630_s1 + $0x14] ss:$8 sps:$4 sm:$0xff]  }
   0x2   :  { %329 = vmatprep.subr.bf16.mxu0 %v1080_v0  ;;  %v1085_v3 = vld [vmem:[%s1630_s1 + $0x10] ss:$8 sps:$4 sm:$0xff]   ;;  %v1086_v4 = vld [vmem:[%s1630_s1 + $0x24] ss:$8 sps:$4 sm:$0xff]   ;;  %v1088_v5 = vld [vmem:[%s1630_s1 + $0x20] ss:$8 sps:$4 sm:$0xff]   ;;  %v79_v0 = vlaneseq }
   0x3   :  { %330 = vmatpush1.bf16.msra.mxu0 %v1082_v1  ;;  %v1089_v6 = vld [vmem:[%s1630_s1 + $0x34] ss:$8 sps:$4 sm:$0xff]   ;;  %v1091_v7 = vld [vmem:[%s1630_s1 + $0x30] ss:$8 sps:$4 sm:$0xff]   ;;  %v1092_v8 = vld [vmem:[%s1630_s1 + $0x44] ss:$8 sps:$4 sm:$0xff]  }
   0x4   :  { %331 = vmatprep.subr.bf16.mxu0 %v1083_v2  ;;  %v1094_v9 = vld [vmem:[%s1630_s1 + $0x40] ss:$8 sps:$4 sm:$0xff]   ;;  %v1095_v10 = vld [vmem:[%s1630_s1 + $0x54] ss:$8 sps:$4 sm:$0xff]   ;;  %v1097_v11 = vld [vmem:[%s1630_s1 + $0x50] ss:$8 sps:$4 sm:$0xff]  }
   0x5   :  { %v1098_v12 = vld [vmem:[%s1630_s1 + $0x64] ss:$8 sps:$4 sm:$0xff]   ;;  %v1100_v14 = vld [vmem:[%s1630_s1 + $0x60] ss:$8 sps:$4 sm:$0xff]   ;;  %v1101_v15 = vld [vmem:[%s1630_s1 + $0x74] ss:$8 sps:$4 sm:$0xff]  }
   0x6   :  { %v1130_v13 = vld [vmem:[%s1631_s0 + $0x4] ss:$8 sps:$4 sm:$0xff]   ;;  %v1103_v16 = vld [vmem:[%s1630_s1 + $0x70] ss:$8 sps:$4 sm:$0xff]   ;;  %v1106_v18 = vld [vmem:[%s1630_s1 + $0x80] ss:$8 sps:$4 sm:$0xff]  }
   0x7   :  { %332 = vmatpush1.bf16.msra.mxu0 %v1085_v3  ;;  %361 = vmatprep.mubr.bf16.mxu0 %v1130_v13  ;;  %v1104_v17 = vld [vmem:[%s1630_s1 + $0x84] ss:$8 sps:$4 sm:$0xff]   ;;  %v1107_v19 = vld [vmem:[%s1630_s1 + $0x94] ss:$8 sps:$4 sm:$0xff]   ;;  %v1109_v21 = vld [vmem:[%s1630_s1 + $0x90] ss:$8 sps:$4 sm:$0xff]  }
   0x8   :  { %333 = vmatprep.subr.bf16.mxu0 %v1086_v4  ;;  %v1152_v20 = vld [vmem:[%s1632_s3 + $0x40] sm:$0xff]   ;;  %v1154_v24 = vld [vmem:[%s1632_s3 + $0x48] sm:$0xff]   ;;  %v1156_v26 = vld [vmem:[%s1632_s3 + $0x50] sm:$0xff]   ;;  %v80_v1 = vshrl.u32 %v79_v0, 7 }
   0x9   :  { %v1153_v22 = vld [vmem:[%s1632_s3] sm:$0xff]   ;;  %1016 = vmatprep.subr.bf16.mxu1 %v1152_v20  ;;  %v1155_v25 = vld [vmem:[%s1632_s3 + $0x8] sm:$0xff]   ;;  %v1113_v28 = vld [vmem:[%s1630_s1 + $0xb4] ss:$8 sps:$4 sm:$0xff]  }
   0xa   :  { %v1110_v23 = vld [vmem:[%s1630_s1 + $0xa4] ss:$8 sps:$4 sm:$0xff]   ;;  %1017 = vmatpush3.bf16.msra.mxu1 %v1153_v22  ;;  %v1112_v27 = vld [vmem:[%s1630_s1 + $0xa0] ss:$8 sps:$4 sm:$0xff]   ;;  %v1157_v29 = vld [vmem:[%s1632_s3 + $0x10] sm:$0xff]   ;;  %v81_v2 = vsub.s32 0, %v80_v1 }
   0xb   :  { %334 = vmatpush1.bf16.msra.mxu0 %v1088_v5  ;;  %1018 = vmatprep.subr.bf16.mxu1 %v1154_v24  ;;  %v1158_v30 = vld [vmem:[%s1632_s3 + $0x58] sm:$0xff]   ;;  %v1116_v32 = vld [vmem:[%s1630_s1 + $0xc4] ss:$8 sps:$4 sm:$0xff]   ;;  %v1118_v35 = vld [vmem:[%s1630_s1 + $0xc0] ss:$8 sps:$4 sm:$0xff]   ;;  %v85_v4 = vsub.s32 1, %v80_v1 }
   0xc   :  { %335 = vmatprep.subr.bf16.mxu0 %v1089_v6  ;;  %v1115_v31 = vld [vmem:[%s1630_s1 + $0xb0] ss:$8 sps:$4 sm:$0xff]   ;;  %v1160_v34 = vld [vmem:[%s1632_s3 + $0x60] sm:$0xff]   ;;  %v1119_v37 = vld [vmem:[%s1630_s1 + $0xd4] ss:$8 sps:$4 sm:$0xff]  }
   0xd   :  { %v1159_v33 = vld [vmem:[%s1632_s3 + $0x18] sm:$0xff]   ;;  %v1161_v36 = vld [vmem:[%s1632_s3 + $0x20] sm:$0xff]   ;;  %v1162_v38 = vld [vmem:[%s1632_s3 + $0x68] sm:$0xff]  }
   0xe   :  { %1019 = vmatpush3.bf16.msra.mxu1 %v1155_v25  ;;  %v1121_v39 = vld [vmem:[%s1630_s1 + $0xd0] ss:$8 sps:$4 sm:$0xff]   ;;  %v1122_v40 = vld [vmem:[%s1630_s1 + $0xe4] ss:$8 sps:$4 sm:$0xff]   ;;  %v1124_v41 = vld [vmem:[%s1630_s1 + $0xe0] ss:$8 sps:$4 sm:$0xff]  }
   0xf   :  { %336 = vmatpush1.bf16.msra.mxu0 %v1091_v7  ;;  %1020 = vmatprep.subr.bf16.mxu1 %v1156_v26  ;;  %v1125_v42 = vld [vmem:[%s1630_s1 + $0xf4] ss:$8 sps:$4 sm:$0xff]   ;;  %v1127_v43 = vld [vmem:[%s1630_s1 + $0xf0] ss:$8 sps:$4 sm:$0xff]   ;;  %v1128_v44 = vld [vmem:[%s1631_s0] ss:$8 sps:$4 sm:$0xff]  }
  0x10   :  { %337 = vmatprep.subr.bf16.mxu0 %v1092_v8  ;;  %v1131_v45 = vld [vmem:[%s1631_s0 + $0x14] ss:$8 sps:$4 sm:$0xff]   ;;  %v1133_v46 = vld [vmem:[%s1631_s0 + $0x10] ss:$8 sps:$4 sm:$0xff]   ;;  %v1134_v47 = vld [vmem:[%s1631_s0 + $0x24] ss:$8 sps:$4 sm:$0xff]  }
  0x11   :  { %v1136_v48 = vld [vmem:[%s1631_s0 + $0x20] ss:$8 sps:$4 sm:$0xff]   ;;  %v1137_v49 = vld [vmem:[%s1631_s0 + $0x34] ss:$8 sps:$4 sm:$0xff]   ;;  %v1139_v50 = vld [vmem:[%s1631_s0 + $0x30] ss:$8 sps:$4 sm:$0xff]  }
  0x12   :  { %1021 = vmatpush3.bf16.msra.mxu1 %v1157_v29  ;;  %v1140_v51 = vld [vmem:[%s1631_s0 + $0x44] ss:$8 sps:$4 sm:$0xff]   ;;  %v1142_v52 = vld [vmem:[%s1631_s0 + $0x40] ss:$8 sps:$4 sm:$0xff]   ;;  %v1143_v53 = vld [vmem:[%s1631_s0 + $0x54] ss:$8 sps:$4 sm:$0xff]  }
  0x13   :  { %338 = vmatpush1.bf16.msra.mxu0 %v1094_v9  ;;  %1022 = vmatprep.subr.bf16.mxu1 %v1158_v30  ;;  %v1145_v54 = vld [vmem:[%s1631_s0 + $0x50] ss:$8 sps:$4 sm:$0xff]   ;;  %v1146_v55 = vld [vmem:[%s1631_s0 + $0x64] ss:$8 sps:$4 sm:$0xff]   ;;  %v1148_v56 = vld [vmem:[%s1631_s0 + $0x60] ss:$8 sps:$4 sm:$0xff]  }
  0x14   :  { %339 = vmatprep.subr.bf16.mxu0 %v1095_v10  ;;  %v1149_v57 = vld [vmem:[%s1631_s0 + $0x74] ss:$8 sps:$4 sm:$0xff]   ;;  %v1151_v58 = vld [vmem:[%s1631_s0 + $0x70] ss:$8 sps:$4 sm:$0xff]   ;;  %v1163_v59 = vld [vmem:[%s1632_s3 + $0x28] sm:$0xff]  }
  0x15   :  { %v1164_v60 = vld [vmem:[%s1632_s3 + $0x70] sm:$0xff]   ;;  %v1166_v62 = vld [vmem:[%s1632_s3 + $0x78] sm:$0xff]   ;;  %v77_v3 = vld [vmem:[%s1633_s2] sm:$0x3] }
  0x16   :  { %1023 = vmatpush3.bf16.msra.mxu1 %v1159_v33  ;;  %v1165_v61 = vld [vmem:[%s1632_s3 + $0x30] sm:$0xff]   ;;  %v1167_v63 = vld [vmem:[%s1632_s3 + $0x38] sm:$0xff]   ;;  %v1467_v5 = vrot.slane %v77_v3, %v81_v2  ;;  %v1469_v6 = vrot.slane %v77_v3, %v85_v4 }
  0x17   :  { %340 = vmatpush1.bf16.msra.mxu0 %v1097_v11  ;;  %1024 = vmatprep.subr.bf16.mxu1 %v1160_v34 }
  0x18   :  { %341 = vmatprep.subr.bf16.mxu0 %v1098_v12 }
  0x1a   :  { %1025 = vmatpush3.bf16.msra.mxu1 %v1161_v36 }
  0x1b   :  { %342 = vmatpush1.bf16.msra.mxu0 %v1100_v14  ;;  %1026 = vmatprep.subr.bf16.mxu1 %v1162_v38 }
  0x1c   :  { %343 = vmatprep.subr.bf16.mxu0 %v1101_v15 }
  0x1e   :  { %1027 = vmatpush3.bf16.msra.mxu1 %v1163_v59 }
  0x1f   :  { %344 = vmatpush1.bf16.msra.mxu0 %v1103_v16  ;;  %1028 = vmatprep.subr.bf16.mxu1 %v1164_v60 }
  0x20   :  { %345 = vmatprep.subr.bf16.mxu0 %v1104_v17 }
  0x22   :  { %1029 = vmatpush3.bf16.msra.mxu1 %v1165_v61 }
  0x23   :  { %346 = vmatpush1.bf16.msra.mxu0 %v1106_v18  ;;  %1030 = vmatprep.subr.bf16.mxu1 %v1166_v62 }
  0x24   :  { %347 = vmatprep.subr.bf16.mxu0 %v1107_v19 }
  0x26   :  { %1031 = vmatpush3.bf16.msra.mxu1 %v1167_v63 }
  0x27   :  { %348 = vmatpush1.bf16.msra.mxu0 %v1109_v21 }
  0x28   :  { %349 = vmatprep.subr.bf16.mxu0 %v1110_v23 }
  0x2b   :  { %350 = vmatpush1.bf16.msra.mxu0 %v1112_v27 }
  0x2c   :  { %351 = vmatprep.subr.bf16.mxu0 %v1113_v28 }
  0x2f   :  { %352 = vmatpush1.bf16.msra.mxu0 %v1115_v31 }
  0x30   :  { %353 = vmatprep.subr.bf16.mxu0 %v1116_v32 }
  0x33   :  { %354 = vmatpush1.bf16.msra.mxu0 %v1118_v35 }
  0x34   :  { %355 = vmatprep.subr.bf16.mxu0 %v1119_v37 }
  0x37   :  { %356 = vmatpush1.bf16.msra.mxu0 %v1121_v39 }
  0x38   :  { %357 = vmatprep.subr.bf16.mxu0 %v1122_v40 }
  0x3b   :  { %358 = vmatpush1.bf16.msra.mxu0 %v1124_v41 }
  0x3c   :  { %359 = vmatprep.subr.bf16.mxu0 %v1125_v42 }
  0x3f   :  { %360 = vmatpush1.bf16.msra.mxu0 %v1127_v43 }
  0x42   :  { %362 = vmatmul.mubr.bf16.vlgmr.msra.gmra.mrb[0].mxu0 %v1128_v44 }
  0x43   :  { %371 = vmatprep.mubr.bf16.mxu0 %v1131_v45 }
  0x4a   :  { %372 = vmatmul.mubr.bf16.gmra.mrb[4].mxu0 %v1133_v46 }
  0x4b   :  { %381 = vmatprep.mubr.bf16.mxu0 %v1134_v47 }
  0x52   :  { %382 = vmatmul.mubr.bf16.gmra.mrb[8].mxu0 %v1136_v48 }
  0x53   :  { %391 = vmatprep.mubr.bf16.mxu0 %v1137_v49 }
  0x5a   :  { %392 = vmatmul.mubr.bf16.gmra.mrb[12].mxu0 %v1139_v50 }
  0x5b   :  { %401 = vmatprep.mubr.bf16.mxu0 %v1140_v51 }
  0x62   :  { %402 = vmatmul.mubr.bf16.gmra.mrb[16].mxu0 %v1142_v52 }
  0x63   :  { %411 = vmatprep.mubr.bf16.mxu0 %v1143_v53 }
  0x6a   :  { %412 = vmatmul.mubr.bf16.gmra.mrb[20].mxu0 %v1145_v54 }
  0x6b   :  { %421 = vmatprep.mubr.bf16.mxu0 %v1146_v55 }
  0x72   :  { %422 = vmatmul.mubr.bf16.gmra.mrb[24].mxu0 %v1148_v56 }
  0x73   :  { %431 = vmatprep.mubr.bf16.mxu0 %v1149_v57 }
  0x7a   :  { %432 = vmatmul.mubr.bf16.gmra.mrb[28].mxu0 %v1151_v58 }
 0x115   :  { %v363_v7 = vpop.f32.mrb[0].mxu0 }
 0x116   :  { %v364_v8 = vadd.f32 %v363_v7, %v1467_v5  ;;  %v365_v9 = vpop.f32.mrb[1].mxu0 }
 0x117   :  { %v366_v10 = vadd.f32 %v365_v9, %v1469_v6  ;;  %v367_v11 = vpop.f32.mrb[2].mxu0 }
 0x118   :  { %v368_v12 = vadd.f32 %v367_v11, %v1467_v5  ;;  %v369_v13 = vpop.f32.mrb[3].mxu0  ;;  %v442_v15 = vmax.f32 %v364_v8, 0.0 }
 0x119   :  { %v370_v14 = vadd.f32 %v369_v13, %v1469_v6  ;;  %v443_v17 = vmax.f32 %v366_v10, 0.0 }
 0x11a   :  { %v444_v16 = vmax.f32 %v368_v12, 0.0 }
 0x11b   :  { %v445_v18 = vmax.f32 %v370_v14, 0.0 }
 0x11c   :  { %v474_v19 = vpack.c.bf16 %v444_v16, %v442_v15 }
 0x11d   :  { %v373_v20 = vpop.f32.mrb[4].mxu0  ;;  %v475_v21 = vpack.c.bf16 %v445_v18, %v443_v17 }
 0x11e   :  { %v374_v22 = vadd.f32 %v373_v20, %v1467_v5  ;;  %v375_v23 = vpop.f32.mrb[5].mxu0 }
 0x11f   :  { %v376_v24 = vadd.f32 %v375_v23, %v1469_v6  ;;  %v377_v25 = vpop.f32.mrb[6].mxu0  ;;  %657 = vmatprep.mubr.bf16.mxu1 %v475_v21 }
 0x120   :  { %v378_v26 = vadd.f32 %v377_v25, %v1467_v5  ;;  %v379_v27 = vpop.f32.mrb[7].mxu0  ;;  %658 = vmatmul.mubr.bf16.vlgmr.msra.gmra.mrb[0].mxu1 %v474_v19  ;;  %v446_v29 = vmax.f32 %v374_v22, 0.0 }
 0x121   :  { %v380_v28 = vadd.f32 %v379_v27, %v1469_v6  ;;  %v447_v31 = vmax.f32 %v376_v24, 0.0 }
 0x122   :  { %v448_v30 = vmax.f32 %v378_v26, 0.0 }
 0x123   :  { %v449_v32 = vmax.f32 %v380_v28, 0.0 }
 0x124   :  { %v476_v33 = vpack.c.bf16 %v448_v30, %v446_v29 }
 0x125   :  { %v477_v34 = vpack.c.bf16 %v449_v32, %v447_v31  ;;  %v383_v35 = vpop.f32.mrb[8].mxu0 }
 0x126   :  { %v384_v36 = vadd.f32 %v383_v35, %v1467_v5  ;;  %v385_v37 = vpop.f32.mrb[9].mxu0 }
 0x127   :  { %v386_v38 = vadd.f32 %v385_v37, %v1469_v6  ;;  %v387_v39 = vpop.f32.mrb[10].mxu0  ;;  %665 = vmatprep.mubr.bf16.mxu1 %v477_v34 }
 0x128   :  { %v388_v40 = vadd.f32 %v387_v39, %v1467_v5  ;;  %v389_v41 = vpop.f32.mrb[11].mxu0  ;;  %666 = vmatmul.mubr.bf16.gmra.mrb[4].mxu1 %v476_v33  ;;  %v450_v43 = vmax.f32 %v384_v36, 0.0 }
 0x129   :  { %v390_v42 = vadd.f32 %v389_v41, %v1469_v6  ;;  %v451_v45 = vmax.f32 %v386_v38, 0.0 }
 0x12a   :  { %v452_v44 = vmax.f32 %v388_v40, 0.0 }
 0x12b   :  { %v453_v46 = vmax.f32 %v390_v42, 0.0 }
 0x12c   :  { %v478_v47 = vpack.c.bf16 %v452_v44, %v450_v43 }
 0x12d   :  { %v479_v48 = vpack.c.bf16 %v453_v46, %v451_v45  ;;  %v393_v49 = vpop.f32.mrb[12].mxu0 }
 0x12e   :  { %v394_v50 = vadd.f32 %v393_v49, %v1467_v5  ;;  %v395_v51 = vpop.f32.mrb[13].mxu0 }
 0x12f   :  { %v396_v52 = vadd.f32 %v395_v51, %v1469_v6  ;;  %v397_v53 = vpop.f32.mrb[14].mxu0  ;;  %673 = vmatprep.mubr.bf16.mxu1 %v479_v48 }
 0x130   :  { %v398_v54 = vadd.f32 %v397_v53, %v1467_v5  ;;  %v399_v55 = vpop.f32.mrb[15].mxu0  ;;  %674 = vmatmul.mubr.bf16.gmra.mrb[8].mxu1 %v478_v47  ;;  %v454_v57 = vmax.f32 %v394_v50, 0.0 }
 0x131   :  { %v400_v56 = vadd.f32 %v399_v55, %v1469_v6  ;;  %v455_v59 = vmax.f32 %v396_v52, 0.0 }
 0x132   :  { %v456_v58 = vmax.f32 %v398_v54, 0.0 }
 0x133   :  { %v457_v60 = vmax.f32 %v400_v56, 0.0 }
 0x134   :  { %v480_v61 = vpack.c.bf16 %v456_v58, %v454_v57  ;;  %v12_v57 = vstv %s1634_s6 }
 0x135   :  { %v481_v62 = vpack.c.bf16 %v457_v60, %v455_v59  ;;  %v403_v63 = vpop.f32.mrb[16].mxu0  ;;  %13 = vst [vmem:[#allocation2] sm:$0x1] %v12_v57 }
 0x136   :  { %v404_v0 = vadd.f32 %v403_v63, %v1467_v5  ;;  %v405_v1 = vpop.f32.mrb[17].mxu0 }
 0x137   :  { %v406_v2 = vadd.f32 %v405_v1, %v1469_v6  ;;  %v407_v3 = vpop.f32.mrb[18].mxu0  ;;  %681 = vmatprep.mubr.bf16.mxu1 %v481_v62 }
 0x138   :  { %v408_v4 = vadd.f32 %v407_v3, %v1467_v5  ;;  %v409_v7 = vpop.f32.mrb[19].mxu0  ;;  %682 = vmatmul.mubr.bf16.gmra.mrb[12].mxu1 %v480_v61  ;;  %v458_v9 = vmax.f32 %v404_v0, 0.0  ;;  %v1515_v0 = vld [vmem:[%s1636_s5] ss:$0 sm:$0xff] }
 0x139   :  { %v410_v8 = vadd.f32 %v409_v7, %v1469_v6  ;;  %v459_v11 = vmax.f32 %v406_v2, 0.0 }
 0x13a   :  { %v460_v10 = vmax.f32 %v408_v4, 0.0 }
 0x13b   :  { %v461_v12 = vmax.f32 %v410_v8, 0.0 }
 0x13c   :  { %v482_v13 = vpack.c.bf16 %v460_v10, %v458_v9 }
 0x13d   :  { %v483_v14 = vpack.c.bf16 %v461_v12, %v459_v11  ;;  %v413_v15 = vpop.f32.mrb[20].mxu0 }
 0x13e   :  { %v414_v16 = vadd.f32 %v413_v15, %v1467_v5  ;;  %v415_v17 = vpop.f32.mrb[21].mxu0 }
 0x13f   :  { %v416_v18 = vadd.f32 %v415_v17, %v1469_v6  ;;  %v417_v19 = vpop.f32.mrb[22].mxu0  ;;  %689 = vmatprep.mubr.bf16.mxu1 %v483_v14 }
 0x140   :  { %v418_v20 = vadd.f32 %v417_v19, %v1467_v5  ;;  %v419_v21 = vpop.f32.mrb[23].mxu0  ;;  %690 = vmatmul.mubr.bf16.gmra.mrb[16].mxu1 %v482_v13  ;;  %v462_v23 = vmax.f32 %v414_v16, 0.0 }
 0x141   :  { %v420_v22 = vadd.f32 %v419_v21, %v1469_v6  ;;  %v463_v25 = vmax.f32 %v416_v18, 0.0 }
 0x142   :  { %v464_v24 = vmax.f32 %v418_v20, 0.0 }
 0x143   :  { %v465_v26 = vmax.f32 %v420_v22, 0.0 }
 0x144   :  { %v484_v27 = vpack.c.bf16 %v464_v24, %v462_v23 }
 0x145   :  { %v485_v28 = vpack.c.bf16 %v465_v26, %v463_v25  ;;  %v423_v29 = vpop.f32.mrb[24].mxu0 }
 0x146   :  { %v424_v30 = vadd.f32 %v423_v29, %v1467_v5  ;;  %v425_v31 = vpop.f32.mrb[25].mxu0 }
 0x147   :  { %v426_v32 = vadd.f32 %v425_v31, %v1469_v6  ;;  %v427_v33 = vpop.f32.mrb[26].mxu0  ;;  %697 = vmatprep.mubr.bf16.mxu1 %v485_v28 }
 0x148   :  { %v428_v34 = vadd.f32 %v427_v33, %v1467_v5  ;;  %v429_v35 = vpop.f32.mrb[27].mxu0  ;;  %698 = vmatmul.mubr.bf16.gmra.mrb[20].mxu1 %v484_v27  ;;  %v466_v37 = vmax.f32 %v424_v30, 0.0 }
 0x149   :  { %v430_v36 = vadd.f32 %v429_v35, %v1469_v6  ;;  %v467_v39 = vmax.f32 %v426_v32, 0.0 }
 0x14a   :  { %v468_v38 = vmax.f32 %v428_v34, 0.0 }
 0x14b   :  { %v469_v40 = vmax.f32 %v430_v36, 0.0 }
 0x14c   :  { %v486_v41 = vpack.c.bf16 %v468_v38, %v466_v37 }
 0x14d   :  { %v487_v42 = vpack.c.bf16 %v469_v40, %v467_v39  ;;  %v433_v43 = vpop.f32.mrb[28].mxu0 }
 0x14e   :  { %v434_v44 = vadd.f32 %v433_v43, %v1467_v5  ;;  %v435_v45 = vpop.f32.mrb[29].mxu0 }
 0x14f   :  { %v436_v46 = vadd.f32 %v435_v45, %v1469_v6  ;;  %v437_v47 = vpop.f32.mrb[30].mxu0  ;;  %705 = vmatprep.mubr.bf16.mxu1 %v487_v42 }
 0x150   :  { %v438_v48 = vadd.f32 %v437_v47, %v1467_v5  ;;  %v439_v49 = vpop.f32.mrb[31].mxu0  ;;  %706 = vmatmul.mubr.bf16.gmra.mrb[24].mxu1 %v486_v41  ;;  %v470_v51 = vmax.f32 %v434_v44, 0.0  ;;  %v1509_v5 = vld [vmem:[%s1635_s4] ss:$0 sm:$0xff] }
 0x151   :  { %v440_v50 = vadd.f32 %v439_v49, %v1469_v6  ;;  %v471_v53 = vmax.f32 %v436_v46, 0.0 }
 0x152   :  { %v472_v52 = vmax.f32 %v438_v48, 0.0 }
 0x153   :  { %v473_v54 = vmax.f32 %v440_v50, 0.0 }
 0x154   :  { %v488_v55 = vpack.c.bf16 %v472_v52, %v470_v51 }
 0x155   :  { %v489_v56 = vpack.c.bf16 %v473_v54, %v471_v53 }
 0x157   :  { %713 = vmatprep.mubr.bf16.mxu1 %v489_v56 }
 0x158   :  { %714 = vmatmul.mubr.bf16.gmra.mrb[28].mxu1 %v488_v55 }
 0x1f3   :  { %v1032_v58 = vpop.f32.mrb[0].mxu1 }
 0x1f4   :  { %v1033_v59 = vpop.f32.mrb[1].mxu1 }
 0x1f5   :  { %v1034_v6 = vadd.f32 %v1033_v59, %v1032_v58  ;;  %v1035_v60 = vpop.f32.mrb[2].mxu1 }
 0x1f6   :  { %v1036_v61 = vpop.f32.mrb[3].mxu1 }
 0x1f7   :  { %v1037_v62 = vadd.f32 %v1036_v61, %v1035_v60  ;;  %v660_v63 = vadd.f32 %v1034_v6, %v1509_v5 }
 0x1f9   :  { %v663_v1 = vadd.f32 %v1037_v62, %v1509_v5  ;;  %v722_v2 = vmax.f32 %v660_v63, 0.0 }
 0x1fb   :  { %v723_v3 = vmax.f32 %v663_v1, 0.0  ;;  %v1038_v4 = vpop.f32.mrb[4].mxu1  ;;  %v745_v7 = vmul.f32 %v1515_v0, %v722_v2 }
 0x1fc   :  { %v1039_v8 = vpop.f32.mrb[5].mxu1 }
 0x1fd   :  { %v1040_v9 = vadd.f32 %v1039_v8, %v1038_v4  ;;  %v1041_v10 = vpop.f32.mrb[6].mxu1  ;;  %761 = vadd.xlane.f32.xlu0 %v745_v7  ;;  %v746_v13 = vmul.f32 %v1515_v0, %v723_v3 }
 0x1fe   :  { %v1042_v11 = vpop.f32.mrb[7].mxu1 }
 0x1ff   :  { %v1043_v12 = vadd.f32 %v1042_v11, %v1041_v10  ;;  %v668_v14 = vadd.f32 %v1040_v9, %v1509_v5 }
 0x201   :  { %v671_v15 = vadd.f32 %v1043_v12, %v1509_v5  ;;  %763 = vadd.xlane.f32.xlu0 %v746_v13  ;;  %v724_v16 = vmax.f32 %v668_v14, 0.0 }
 0x203   :  { %v725_v17 = vmax.f32 %v671_v15, 0.0  ;;  %v1044_v18 = vpop.f32.mrb[8].mxu1  ;;  %v747_v19 = vmul.f32 %v1515_v0, %v724_v16 }
 0x204   :  { %v1045_v20 = vpop.f32.mrb[9].mxu1 }
 0x205   :  { %v1046_v21 = vadd.f32 %v1045_v20, %v1044_v18  ;;  %v1047_v22 = vpop.f32.mrb[10].mxu1  ;;  %765 = vadd.xlane.f32.xlu1 %v747_v19  ;;  %v748_v26 = vmul.f32 %v1515_v0, %v725_v17 }
 0x206   :  { %v1048_v23 = vpop.f32.mrb[11].mxu1 }
 0x207   :  { %v676_v24 = vadd.f32 %v1046_v21, %v1509_v5  ;;  %v1049_v25 = vadd.f32 %v1048_v23, %v1047_v22 }
 0x209   :  { %v726_v27 = vmax.f32 %v676_v24, 0.0  ;;  %v679_v28 = vadd.f32 %v1049_v25, %v1509_v5  ;;  %767 = vadd.xlane.f32.xlu1 %v748_v26 }
 0x20b   :  { %v727_v29 = vmax.f32 %v679_v28, 0.0  ;;  %v1050_v30 = vpop.f32.mrb[12].mxu1  ;;  %v749_v31 = vmul.f32 %v1515_v0, %v726_v27 }
 0x20c   :  { %v1051_v32 = vpop.f32.mrb[13].mxu1 }
 0x20d   :  { %v1052_v33 = vadd.f32 %v1051_v32, %v1050_v30  ;;  %v1053_v34 = vpop.f32.mrb[14].mxu1  ;;  %769 = vadd.xlane.f32.xlu0 %v749_v31  ;;  %v750_v35 = vmul.f32 %v1515_v0, %v727_v29  ;;  %v1548_v30 = vld [vmem:[#allocation2] ss:$0 sm:$0xff] }
 0x20e   :  { %v1054_v36 = vpop.f32.mrb[15].mxu1 }
 0x20f   :  { %v684_v37 = vadd.f32 %v1052_v33, %v1509_v5  ;;  %v1055_v38 = vadd.f32 %v1054_v36, %v1053_v34  ;;  %771 = vadd.xlane.f32.xlu1 %v750_v35 }
 0x211   :  { %v728_v39 = vmax.f32 %v684_v37, 0.0  ;;  %v687_v40 = vadd.f32 %v1055_v38, %v1509_v5 }
 0x213   :  { %v729_v41 = vmax.f32 %v687_v40, 0.0  ;;  %v1056_v42 = vpop.f32.mrb[16].mxu1  ;;  %v751_v43 = vmul.f32 %v1515_v0, %v728_v39 }
 0x214   :  { %v1057_v44 = vpop.f32.mrb[17].mxu1 }
 0x215   :  { %v1058_v45 = vadd.f32 %v1057_v44, %v1056_v42  ;;  %v1059_v46 = vpop.f32.mrb[18].mxu1  ;;  %773 = vadd.xlane.f32.xlu0 %v751_v43  ;;  %v752_v47 = vmul.f32 %v1515_v0, %v729_v41 }
 0x216   :  { %v1060_v48 = vpop.f32.mrb[19].mxu1 }
 0x217   :  { %v692_v49 = vadd.f32 %v1058_v45, %v1509_v5  ;;  %v1061_v50 = vadd.f32 %v1060_v48, %v1059_v46  ;;  %775 = vadd.xlane.f32.xlu1 %v752_v47 }
 0x219   :  { %v730_v51 = vmax.f32 %v692_v49, 0.0  ;;  %v695_v52 = vadd.f32 %v1061_v50, %v1509_v5 }
 0x21b   :  { %v731_v53 = vmax.f32 %v695_v52, 0.0  ;;  %v1062_v54 = vpop.f32.mrb[20].mxu1  ;;  %v753_v55 = vmul.f32 %v1515_v0, %v730_v51 }
 0x21c   :  { %v1063_v56 = vpop.f32.mrb[21].mxu1 }
 0x21d   :  { %v1064_v57 = vadd.f32 %v1063_v56, %v1062_v54  ;;  %v1065_v58 = vpop.f32.mrb[22].mxu1  ;;  %777 = vadd.xlane.f32.xlu0 %v753_v55  ;;  %v754_v59 = vmul.f32 %v1515_v0, %v731_v53 }
 0x21e   :  { %v1066_v6 = vpop.f32.mrb[23].mxu1 }
 0x21f   :  { %v700_v60 = vadd.f32 %v1064_v57, %v1509_v5  ;;  %v1067_v61 = vadd.f32 %v1066_v6, %v1065_v58  ;;  %779 = vadd.xlane.f32.xlu1 %v754_v59 }
 0x221   :  { %v732_v62 = vmax.f32 %v700_v60, 0.0  ;;  %v703_v63 = vadd.f32 %v1067_v61, %v1509_v5 }
 0x223   :  { %v733_v1 = vmax.f32 %v703_v63, 0.0  ;;  %v1068_v2 = vpop.f32.mrb[24].mxu1  ;;  %v755_v3 = vmul.f32 %v1515_v0, %v732_v62 }
 0x224   :  { %v1069_v4 = vpop.f32.mrb[25].mxu1 }
 0x225   :  { %v1070_v7 = vadd.f32 %v1069_v4, %v1068_v2  ;;  %v1071_v8 = vpop.f32.mrb[26].mxu1  ;;  %781 = vadd.xlane.f32.xlu0 %v755_v3  ;;  %v756_v9 = vmul.f32 %v1515_v0, %v733_v1 }
 0x226   :  { %v1072_v10 = vpop.f32.mrb[27].mxu1 }
 0x227   :  { %v708_v11 = vadd.f32 %v1070_v7, %v1509_v5  ;;  %v1073_v12 = vadd.f32 %v1072_v10, %v1071_v8  ;;  %783 = vadd.xlane.f32.xlu1 %v756_v9 }
 0x229   :  { %v734_v13 = vmax.f32 %v708_v11, 0.0  ;;  %v711_v14 = vadd.f32 %v1073_v12, %v1509_v5 }
 0x22b   :  { %v735_v15 = vmax.f32 %v711_v14, 0.0  ;;  %v1074_v16 = vpop.f32.mrb[28].mxu1  ;;  %v757_v17 = vmul.f32 %v1515_v0, %v734_v13 }
 0x22c   :  { %v1075_v18 = vpop.f32.mrb[29].mxu1 }
 0x22d   :  { %v1076_v19 = vadd.f32 %v1075_v18, %v1074_v16  ;;  %v1077_v20 = vpop.f32.mrb[30].mxu1  ;;  %785 = vadd.xlane.f32.xlu0 %v757_v17  ;;  %v758_v21 = vmul.f32 %v1515_v0, %v735_v15 }
 0x22e   :  { %v1078_v22 = vpop.f32.mrb[31].mxu1 }
 0x22f   :  { %v716_v23 = vadd.f32 %v1076_v19, %v1509_v5  ;;  %v1079_v24 = vadd.f32 %v1078_v22, %v1077_v20  ;;  %787 = vadd.xlane.f32.xlu1 %v758_v21 }
 0x231   :  { %v736_v25 = vmax.f32 %v716_v23, 0.0  ;;  %v719_v26 = vadd.f32 %v1079_v24, %v1509_v5 }
 0x233   :  { %v737_v27 = vmax.f32 %v719_v26, 0.0  ;;  %v759_v28 = vmul.f32 %v1515_v0, %v736_v25 }
 0x235   :  { %789 = vadd.xlane.f32.xlu0 %v759_v28  ;;  %v760_v29 = vmul.f32 %v1515_v0, %v737_v27 }
 0x237   :  { %791 = vadd.xlane.f32.xlu1 %v760_v29 }
 0x28a   :  { %v762_v31 = vpop.xlane.xlu0 %761 }
 0x28b   :  { %v800_v32 = vadd.f32 %v1548_v30, %v762_v31 }
 0x28d   :  { %v1000_v33 = vmul.f32 -1.442695, %v800_v32 }
 0x28e   :  { %v764_v34 = vpop.xlane.xlu0 %763 }
 0x28f   :  { %1168 = vpow2.f32 %v1000_v33  ;;  %v801_v35 = vadd.f32 %v1548_v30, %v764_v34 }
 0x291   :  { %v1001_v36 = vmul.f32 -1.442695, %v801_v35 }
 0x292   :  { %v766_v37 = vpop.xlane.xlu1 %765 }
 0x293   :  { %1170 = vpow2.f32 %v1001_v36  ;;  %v802_v5 = vadd.f32 %v1548_v30, %v766_v37 }
 0x295   :  { %v1002_v38 = vmul.f32 -1.442695, %v802_v5 }
 0x296   :  { %v768_v39 = vpop.xlane.xlu1 %767 }
 0x297   :  { %1172 = vpow2.f32 %v1002_v38  ;;  %v803_v0 = vadd.f32 %v1548_v30, %v768_v39 }
 0x299   :  { %v1169_v40 = vpop.eup %1168  ;;  %v1003_v41 = vmul.f32 -1.442695, %v803_v0 }
 0x29a   :  { %v864_v42 = vadd.f32 1.0, %v1169_v40  ;;  %v770_v43 = vpop.xlane.xlu0 %769 }
 0x29b   :  { %1174 = vpow2.f32 %v1003_v41  ;;  %v804_v44 = vadd.f32 %v1548_v30, %v770_v43 }
 0x29c   :  { %1176 = vrcp.f32 %v864_v42  ;;  %v772_v45 = vpop.xlane.xlu1 %771 }
 0x29d   :  { %v1171_v46 = vpop.eup %1170  ;;  %v1004_v47 = vmul.f32 -1.442695, %v804_v44  ;;  %v805_v48 = vadd.f32 %v1548_v30, %v772_v45 }
 0x29e   :  { %v865_v49 = vadd.f32 1.0, %v1171_v46 }
 0x29f   :  { %1178 = vpow2.f32 %v1004_v47  ;;  %v1005_v50 = vmul.f32 -1.442695, %v805_v48 }
 0x2a0   :  { %1180 = vrcp.f32 %v865_v49 }
 0x2a1   :  { %v1173_v51 = vpop.eup %1172  ;;  %1182 = vpow2.f32 %v1005_v50 }
 0x2a2   :  { %v866_v52 = vadd.f32 1.0, %v1173_v51  ;;  %v774_v53 = vpop.xlane.xlu0 %773 }
 0x2a3   :  { %v806_v54 = vadd.f32 %v1548_v30, %v774_v53 }
 0x2a4   :  { %1184 = vrcp.f32 %v866_v52  ;;  %v776_v55 = vpop.xlane.xlu1 %775 }
 0x2a5   :  { %v1175_v56 = vpop.eup %1174  ;;  %v1006_v57 = vmul.f32 -1.442695, %v806_v54  ;;  %v807_v58 = vadd.f32 %v1548_v30, %v776_v55 }
 0x2a6   :  { %v1177_v59 = vpop.eup %1176  ;;  %v867_v6 = vadd.f32 1.0, %v1175_v56 }
 0x2a7   :  { %913 = vst.msk [vmem:[%s1637_s7] sm:$0xff] %vm912_vm0, %v1177_v59  ;;  %1186 = vpow2.f32 %v1006_v57  ;;  %v1007_v60 = vmul.f32 -1.442695, %v807_v58 }
 0x2a8   :  { %1188 = vrcp.f32 %v867_v6 }
 0x2a9   :  { %v1179_v61 = vpop.eup %1178  ;;  %1190 = vpow2.f32 %v1007_v60 }
 0x2aa   :  { %v1181_v62 = vpop.eup %1180  ;;  %v868_v63 = vadd.f32 1.0, %v1179_v61  ;;  %v778_v1 = vpop.xlane.xlu0 %777 }
 0x2ab   :  { %v1183_v2 = vpop.eup %1182  ;;  %914 = vst.msk [vmem:[%s1637_s7 + $0x8] sm:$0xff] %vm912_vm0, %v1181_v62  ;;  %v808_v3 = vadd.f32 %v1548_v30, %v778_v1 }
 0x2ac   :  { %1192 = vrcp.f32 %v868_v63  ;;  %v869_v4 = vadd.f32 1.0, %v1183_v2  ;;  %v780_v7 = vpop.xlane.xlu1 %779 }
 0x2ad   :  { %v1008_v8 = vmul.f32 -1.442695, %v808_v3  ;;  %v809_v9 = vadd.f32 %v1548_v30, %v780_v7 }
 0x2ae   :  { %v1185_v10 = vpop.eup %1184  ;;  %1194 = vrcp.f32 %v869_v4 }
 0x2af   :  { %915 = vst.msk [vmem:[%s1637_s7 + $0x10] sm:$0xff] %vm912_vm0, %v1185_v10  ;;  %1196 = vpow2.f32 %v1008_v8  ;;  %v1009_v11 = vmul.f32 -1.442695, %v809_v9 }
 0x2b1   :  { %v1187_v12 = vpop.eup %1186  ;;  %1198 = vpow2.f32 %v1009_v11 }
 0x2b2   :  { %v1189_v13 = vpop.eup %1188  ;;  %v870_v14 = vadd.f32 1.0, %v1187_v12  ;;  %v782_v15 = vpop.xlane.xlu0 %781 }
 0x2b3   :  { %v1191_v16 = vpop.eup %1190  ;;  %916 = vst.msk [vmem:[%s1637_s7 + $0x18] sm:$0xff] %vm912_vm0, %v1189_v13  ;;  %v810_v17 = vadd.f32 %v1548_v30, %v782_v15 }
 0x2b4   :  { %1200 = vrcp.f32 %v870_v14  ;;  %v871_v18 = vadd.f32 1.0, %v1191_v16  ;;  %v784_v19 = vpop.xlane.xlu1 %783 }
 0x2b5   :  { %v1010_v20 = vmul.f32 -1.442695, %v810_v17  ;;  %v811_v21 = vadd.f32 %v1548_v30, %v784_v19 }
 0x2b6   :  { %v1193_v22 = vpop.eup %1192  ;;  %1202 = vrcp.f32 %v871_v18 }
 0x2b7   :  { %917 = vst.msk [vmem:[%s1637_s7 + $0x20] sm:$0xff] %vm912_vm0, %v1193_v22  ;;  %1204 = vpow2.f32 %v1010_v20  ;;  %v1011_v23 = vmul.f32 -1.442695, %v811_v21 }
 0x2b8   :  { %v1195_v24 = vpop.eup %1194 }
 0x2b9   :  { %v1197_v25 = vpop.eup %1196  ;;  %918 = vst.msk [vmem:[%s1637_s7 + $0x28] sm:$0xff] %vm912_vm0, %v1195_v24  ;;  %1206 = vpow2.f32 %v1011_v23 }
 0x2ba   :  { %v872_v26 = vadd.f32 1.0, %v1197_v25  ;;  %v786_v27 = vpop.xlane.xlu0 %785 }
 0x2bb   :  { %v1199_v28 = vpop.eup %1198  ;;  %v812_v29 = vadd.f32 %v1548_v30, %v786_v27 }
 0x2bc   :  { %1208 = vrcp.f32 %v872_v26  ;;  %v873_v31 = vadd.f32 1.0, %v1199_v28  ;;  %v788_v32 = vpop.xlane.xlu1 %787 }
 0x2bd   :  { %v1012_v33 = vmul.f32 -1.442695, %v812_v29  ;;  %v813_v34 = vadd.f32 %v1548_v30, %v788_v32 }
 0x2be   :  { %v1201_v35 = vpop.eup %1200  ;;  %1210 = vrcp.f32 %v873_v31 }
 0x2bf   :  { %919 = vst.msk [vmem:[%s1637_s7 + $0x30] sm:$0xff] %vm912_vm0, %v1201_v35  ;;  %1212 = vpow2.f32 %v1012_v33  ;;  %v1013_v36 = vmul.f32 -1.442695, %v813_v34 }
 0x2c0   :  { %v1203_v37 = vpop.eup %1202 }
 0x2c1   :  { %v1205_v5 = vpop.eup %1204  ;;  %920 = vst.msk [vmem:[%s1637_s7 + $0x38] sm:$0xff] %vm912_vm0, %v1203_v37  ;;  %1214 = vpow2.f32 %v1013_v36 }
 0x2c2   :  { %v874_v38 = vadd.f32 1.0, %v1205_v5  ;;  %v790_v39 = vpop.xlane.xlu0 %789 }
 0x2c3   :  { %v1207_v0 = vpop.eup %1206  ;;  %v814_v40 = vadd.f32 %v1548_v30, %v790_v39 }
 0x2c4   :  { %1216 = vrcp.f32 %v874_v38  ;;  %v875_v41 = vadd.f32 1.0, %v1207_v0  ;;  %v792_v42 = vpop.xlane.xlu1 %791 }
 0x2c5   :  { %v1014_v43 = vmul.f32 -1.442695, %v814_v40  ;;  %v815_v44 = vadd.f32 %v1548_v30, %v792_v42 }
 0x2c6   :  { %v1209_v45 = vpop.eup %1208  ;;  %1218 = vrcp.f32 %v875_v41 }
 0x2c7   :  { %921 = vst.msk [vmem:[%s1637_s7 + $0x40] sm:$0xff] %vm912_vm0, %v1209_v45  ;;  %1220 = vpow2.f32 %v1014_v43  ;;  %v1015_v46 = vmul.f32 -1.442695, %v815_v44 }
 0x2c8   :  { %v1211_v47 = vpop.eup %1210 }
 0x2c9   :  { %v1213_v48 = vpop.eup %1212  ;;  %922 = vst.msk [vmem:[%s1637_s7 + $0x48] sm:$0xff] %vm912_vm0, %v1211_v47  ;;  %1222 = vpow2.f32 %v1015_v46 }
 0x2ca   :  { %v876_v49 = vadd.f32 1.0, %v1213_v48 }
 0x2cb   :  { %v1215_v50 = vpop.eup %1214 }
 0x2cc   :  { %1224 = vrcp.f32 %v876_v49  ;;  %v877_v30 = vadd.f32 1.0, %v1215_v50 }
 0x2ce   :  { %v1217_v51 = vpop.eup %1216  ;;  %1226 = vrcp.f32 %v877_v30 }
 0x2cf   :  { %923 = vst.msk [vmem:[%s1637_s7 + $0x50] sm:$0xff] %vm912_vm0, %v1217_v51 }
 0x2d0   :  { %v1219_v52 = vpop.eup %1218 }
 0x2d1   :  { %v1221_v53 = vpop.eup %1220  ;;  %924 = vst.msk [vmem:[%s1637_s7 + $0x58] sm:$0xff] %vm912_vm0, %v1219_v52 }
 0x2d2   :  { %v878_v54 = vadd.f32 1.0, %v1221_v53 }
 0x2d3   :  { %v1223_v55 = vpop.eup %1222 }
 0x2d4   :  { %1228 = vrcp.f32 %v878_v54  ;;  %v879_v56 = vadd.f32 1.0, %v1223_v55 }
 0x2d6   :  { %v1225_v57 = vpop.eup %1224  ;;  %1230 = vrcp.f32 %v879_v56 }
 0x2d7   :  { %925 = vst.msk [vmem:[%s1637_s7 + $0x60] sm:$0xff] %vm912_vm0, %v1225_v57 }
 0x2d8   :  { %v1227_v58 = vpop.eup %1226 }
 0x2d9   :  { %926 = vst.msk [vmem:[%s1637_s7 + $0x68] sm:$0xff] %vm912_vm0, %v1227_v58 }
 0x2de   :  { %v1229_v59 = vpop.eup %1228 }
 0x2df   :  { %927 = vst.msk [vmem:[%s1637_s7 + $0x70] sm:$0xff] %vm912_vm0, %v1229_v59 }
 0x2e0   :  { %v1231_v6 = vpop.eup %1230 }
 0x2e1   :  { %928 = vst.msk [vmem:[%s1637_s7 + $0x78] sm:$0xff] %vm912_vm0, %v1231_v6 }

</bundles_post_ra>
